<compile_context>
chip_gen: v5e
topology: v5e:2x2
jax: 0.10.0
libtpu: 0.0.40
codegen_flags: <defaults>
</compile_context>

<pallas_src>
import functools

import jax
import jax.numpy as jnp
from jax.experimental import pallas as pl
from jax.experimental.pallas import tpu as pltpu


def _cdiv(a, b):
    return -(-a // b)


def _round_up(x, m):
    return ((x + m - 1) // m) * m


def _focal_loss_kernel(n_ref, logits_ref, tgt_ref, out_ref, acc_ref, *,
                       alpha, gamma, tile_n, tiles_per_part):
    p = pl.program_id(0)      # "parallel": sharded across TCs when available
    i = pl.program_id(1)      # "arbitrary": serial sweep over this core's tiles
    n_valid = n_ref[0]

    # Zero the per-core scalar accumulator at the start of each sweep.
    @pl.when(i == 0)
    def _():
        acc_ref[...] = jnp.zeros_like(acc_ref)

    x = logits_ref[...].astype(jnp.float32)          # (tile_n, C)
    tgt = tgt_ref[...]                               # (tile_n, 1) int32

    # Numerically stable log-sum-exp over the class (lane) axis.
    m = jnp.max(x, axis=-1, keepdims=True)
    lse = m + jnp.log(jnp.sum(jnp.exp(x - m), axis=-1, keepdims=True))

    # Gather-free target-logit pick: one-hot via iota compare.
    # NOTE: out-of-range targets (incl. ignore_index=-100) silently give
    # tgt_logit = 0 (ce = lse); PyTorch would raise / exclude them.
    col = jax.lax.broadcasted_iota(jnp.int32, x.shape, dimension=1)
    tgt_logit = jnp.sum(jnp.where(col == tgt, x, 0.0), axis=-1, keepdims=True)

    ce = lse - tgt_logit                             # (tile_n, 1)
    pt = jnp.exp(-ce)
    u = jnp.maximum(1.0 - pt, 0.0)   # clamp: rounding can make 1 - pt < 0

    # (1 - pt) ** gamma: repeated VPU multiply for small integer gamma
    # (VPU slot has slack); generic pow (EUP exp+log) otherwise.
    g_int = int(gamma)
    if float(g_int) == float(gamma) and 0 <= g_int <= 8:
        if g_int == 0:
            w = jnp.ones_like(u)
        else:
            w = u
            for _ in range(g_int - 1):
                w = w * u
    else:
        w = u ** gamma

    # TODO(synk): per-class (tensor) alpha is not supported; the module uses a scalar.
    focal = alpha * w * ce                           # (tile_n, 1)

    row0 = (p * tiles_per_part + i) * tile_n

    # Interior tiles: plain reduce.  Boundary / clamped-overrun tiles: mask
    # rows >= n_valid so garbage tail data contributes exactly 0.
    @pl.when(row0 + tile_n <= n_valid)
    def _():
        acc_ref[...] += jnp.sum(focal, keepdims=True)

    @pl.when(row0 + tile_n > n_valid)
    def _():
        rows = row0 + jax.lax.broadcasted_iota(jnp.int32, focal.shape, 0)
        acc_ref[...] += jnp.sum(jnp.where(rows < n_valid, focal, 0.0),
                                keepdims=True)

    @pl.when(i == tiles_per_part - 1)
    def _():
        out_ref[...] = acc_ref[...].reshape(1, 1, 1)


def _chip_defaults():
    """(num_parallel, vmem_budget_bytes) based on the attached TPU generation."""
    try:
        kind = jax.devices()[0].device_kind.lower()
    except Exception:
        kind = ""
    if "v7" in kind:
        return 2, 20 * 1024 * 1024      # 2 TCs/chip, 64 MiB VMEM per TC
    if ("v4" in kind) or ("v5p" in kind):
        return 2, 24 * 1024 * 1024      # megacore, 128 MiB VMEM
    if "v6" in kind:
        return 1, 24 * 1024 * 1024      # 128 MiB VMEM, 1 TC
    return 1, 12 * 1024 * 1024          # v5e / unknown: conservative


def focal_loss(logits, targets, *, alpha=1.0, gamma=2.0, reduction="mean",
               tile_n=1024, num_parallel=None, vmem_budget_bytes=None):
    """logits: (N, C) float; targets: (N,) integer class indices."""
    n, c = logits.shape
    auto_parallel, auto_budget = _chip_defaults()
    if num_parallel is None:
        num_parallel = auto_parallel
    if vmem_budget_bytes is None:
        vmem_budget_bytes = auto_budget

    esize = jnp.dtype(logits.dtype).itemsize
    # Sublane-packing minimum for the row (second-to-last) block dim:
    # 8 for f32, 16 for bf16, 32 for int8/fp8.
    row_align = max(8, 32 // esize)

    # VMEM footprint per tile row, with lane padding to 128:
    #   - logits tile: round_up(C, 128) lanes x esize, double buffered
    #   - int32 target column: padded to 128 lanes, double buffered
    # NOTE(layout): for C << 128 the logits tile is lane-sparse (128/C x
    # inflation); packing classes onto sublanes would fix that but is a larger
    # restructure — we at least account for the inflation in the tile math.
    c_pad = _round_up(c, 128)
    bytes_per_row = 2 * c_pad * esize + 2 * 128 * 4
    max_rows = (vmem_budget_bytes // bytes_per_row) // row_align * row_align
    max_rows = max(row_align, max_rows)

    tile_n = int(min(tile_n, max_rows, _round_up(n, row_align)))
    tile_n = max(row_align, (tile_n // row_align) * row_align)

    total_tiles = _cdiv(n, tile_n)
    num_parallel = int(max(1, min(num_parallel, total_tiles)))
    tiles_per_part = _cdiv(total_tiles, num_parallel)
    last_tile = total_tiles - 1

    # No HBM padding: the last (partial) tile is masked in-kernel; logical
    # tiles past the end of the row range (grid round-up) are clamped to the
    # last real tile and contribute exactly 0 via the mask.
    def block_map(p, i, n_ref):
        del n_ref
        return (jnp.minimum(p * tiles_per_part + i, last_tile), 0)

    tgt2d = targets.astype(jnp.int32).reshape(n, 1)
    n_arr = jnp.array([n], dtype=jnp.int32)

    kernel = functools.partial(
        _focal_loss_kernel, alpha=float(alpha), gamma=float(gamma),
        tile_n=tile_n, tiles_per_part=tiles_per_part)

    cost = pl.CostEstimate(
        flops=8 * n * c,
        transcendentals=n * c + 2 * n,
        bytes_accessed=n * c * esize + n * 4 + num_parallel * 4)

    partials = pl.pallas_call(
        kernel,
        out_shape=jax.ShapeDtypeStruct((num_parallel, 1, 1), jnp.float32),
        grid_spec=pltpu.PrefetchScalarGridSpec(
            num_scalar_prefetch=1,
            grid=(num_parallel, tiles_per_part),
            in_specs=[
                pl.BlockSpec((tile_n, c), block_map),
                pl.BlockSpec((tile_n, 1), block_map),
            ],
            out_specs=pl.BlockSpec((1, 1, 1), lambda p, i, n_ref: (p, 0, 0)),
            scratch_shapes=[pltpu.VMEM((1, 1), jnp.float32)],
        ),
        compiler_params=pltpu.CompilerParams(
            dimension_semantics=("parallel", "arbitrary"),
            vmem_limit_bytes=int(vmem_budget_bytes + 8 * 1024 * 1024)),
        cost_estimate=cost,
    )(n_arr, logits, tgt2d)

    total = jnp.sum(partials)   # one partial sum per (mega)core
    if reduction == "mean":
        return total / n
    elif reduction == "sum":
        return total
    # TODO(synk): 'none' reduction would need a per-row output spec; the
    # module default is 'mean', which is what we implement here.
    raise NotImplementedError("only 'mean' and 'sum' reductions supported")


def _focal_loss_ref(logits, targets, alpha=1.0, gamma=2.0):
    logp = jax.nn.log_softmax(logits.astype(jnp.float32), axis=-1)
    ce = -jnp.take_along_axis(logp, targets[:, None].astype(jnp.int32),
                              axis=-1)[:, 0]
    pt = jnp.exp(-ce)
    return alpha * (1.0 - pt) ** gamma * ce


if __name__ == "__main__":
    key = jax.random.PRNGKey(0)
    k1, k2, k3, k4, k5, k6 = jax.random.split(key, 6)

    # Demo consistent with the module's forward: (N, C) logits + class targets.
    N, C = 32, 16
    logits = jax.random.normal(k1, (N, C), dtype=jnp.float32)
    targets = jax.random.randint(k2, (N,), 0, C, dtype=jnp.int32)
    out = jax.block_until_ready(focal_loss(logits, targets, alpha=1.0, gamma=2.0))
    ref = jnp.mean(_focal_loss_ref(logits, targets))
    assert jnp.allclose(out, ref, atol=1e-5, rtol=1e-5), (out, ref)

    # Ragged tail: N not a multiple of tile_n -> partial last block + in-kernel
    # masking (no HBM padding), with the parallel split exercised.
    N2, C2 = 50, 16
    logits2 = jax.random.normal(k3, (N2, C2), dtype=jnp.float32)
    targets2 = jax.random.randint(k4, (N2,), 0, C2, dtype=jnp.int32)
    out2 = jax.block_until_ready(
        focal_loss(logits2, targets2, tile_n=16, num_parallel=2))
    ref2 = jnp.mean(_focal_loss_ref(logits2, targets2))
    assert jnp.allclose(out2, ref2, atol=1e-5, rtol=1e-5), (out2, ref2)

    # total_tiles (=3) not divisible by num_parallel (=2): exercises the
    # clamped logical-overrun tile, which must contribute exactly 0.
    N3, C3 = 40, 16
    logits3 = jax.random.normal(k5, (N3, C3), dtype=jnp.float32)
    targets3 = jax.random.randint(k6, (N3,), 0, C3, dtype=jnp.int32)
    out3 = jax.block_until_ready(
        focal_loss(logits3, targets3, tile_n=16, num_parallel=2,
                   reduction="sum"))
    ref3 = jnp.sum(_focal_loss_ref(logits3, targets3))
    assert jnp.allclose(out3, ref3, atol=1e-4, rtol=1e-5), (out3, ref3)

    print("KERNEL_OK")
</pallas_src>

<mosaic_0001>
module attributes {stable_mosaic.version = 11 : i64} {
  func.func @_focal_loss_kernel(%arg0: i32, %arg1: i32, %arg2: memref<1xi32, #tpu.memory_space<smem>>, %arg3: memref<32x16xf32, #tpu.memory_space<vmem>>, %arg4: memref<32x1xi32, #tpu.memory_space<vmem>>, %arg5: memref<1x1x1xf32, #tpu.memory_space<vmem>>, %arg6: memref<1x1xf32, #tpu.memory_space<vmem>>) attributes {dimension_semantics = [#tpu.dimension_semantics<parallel>, #tpu.dimension_semantics<arbitrary>], iteration_bounds = array<i64: 1, 1>, scalar_prefetch = 1 : i64, scratch_operands = 1 : i64, tpu.core_type = #tpu.core_type<tc>, window_params = [{transform_indices = @transform_0, window_bounds = array<i64: 32, 16>}, {transform_indices = @transform_1, window_bounds = array<i64: 32, 1>}, {transform_indices = @transform_2, window_bounds = array<i64: 1, 1, 1>}]} {
    %c0 = arith.constant 0 : index
    %0 = memref.load %arg2[%c0] : memref<1xi32, #tpu.memory_space<smem>>
    %c0_i32 = arith.constant 0 : i32
    %1 = arith.cmpi eq, %arg1, %c0_i32 : i32
    %2 = arith.extui %1 : i1 to i32
    %c0_i32_0 = arith.constant 0 : i32
    %3 = arith.cmpi ne, %2, %c0_i32_0 : i32
    scf.if %3 {
      %cst_18 = arith.constant 0.000000e+00 : f32
      %48 = vector.broadcast %cst_18 : f32 to vector<1x1xf32>
      %c0_19 = arith.constant 0 : index
      %c0_20 = arith.constant 0 : index
      %49 = vector.load %arg6[%c0_19, %c0_20] : memref<1x1xf32, #tpu.memory_space<vmem>>, vector<1x1xf32>
      tpu.vector_store %arg6[%c0_19, %c0_20], %48 {strides = array<i32>} : memref<1x1xf32, #tpu.memory_space<vmem>>, vector<1x1xf32>,
    } else {
    }
    %c0_1 = arith.constant 0 : index
    %c0_2 = arith.constant 0 : index
    %4 = vector.load %arg3[%c0_1, %c0_2] : memref<32x16xf32, #tpu.memory_space<vmem>>, vector<32x16xf32>
    %c0_3 = arith.constant 0 : index
    %c0_4 = arith.constant 0 : index
    %5 = vector.load %arg4[%c0_3, %c0_4] : memref<32x1xi32, #tpu.memory_space<vmem>>, vector<32x1xi32>
    %cst = arith.constant dense<0xFF800000> : vector<32xf32>
    %6 = vector.multi_reduction <maximumf>, %4, %cst [1] : vector<32x16xf32> to vector<32xf32>
    %7 = vector.shape_cast %6 : vector<32xf32> to vector<32x1xf32>
    %8 = vector.broadcast %7 : vector<32x1xf32> to vector<32x16xf32>
    %9 = arith.subf %4, %8 : vector<32x16xf32>
    %10 = math.exp %9 : vector<32x16xf32>
    %cst_5 = arith.constant dense<0.000000e+00> : vector<32xf32>
    %11 = vector.multi_reduction <add>, %10, %cst_5 [1] : vector<32x16xf32> to vector<32xf32>
    %12 = vector.shape_cast %11 : vector<32xf32> to vector<32x1xf32>
    %13 = math.log %12 : vector<32x1xf32>
    %14 = arith.addf %7, %13 : vector<32x1xf32>
    %15 = tpu.iota {dimensions = array<i32: 1>} : vector<32x16xi32>
    %16 = vector.broadcast %5 : vector<32x1xi32> to vector<32x16xi32>
    %17 = arith.cmpi eq, %15, %16 : vector<32x16xi32>
    %cst_6 = arith.constant 0.000000e+00 : f32
    %18 = vector.broadcast %cst_6 : f32 to vector<32x16xf32>
    %19 = arith.select %17, %4, %18 : vector<32x16xi1>, vector<32x16xf32>
    %cst_7 = arith.constant dense<0.000000e+00> : vector<32xf32>
    %20 = vector.multi_reduction <add>, %19, %cst_7 [1] : vector<32x16xf32> to vector<32xf32>
    %21 = vector.shape_cast %20 : vector<32xf32> to vector<32x1xf32>
    %22 = arith.subf %14, %21 : vector<32x1xf32>
    %cst_8 = arith.constant 0.000000e+00 : f32
    %23 = vector.broadcast %cst_8 : f32 to vector<32x1xf32>
    %24 = arith.subf %23, %22 : vector<32x1xf32>
    %25 = math.exp %24 : vector<32x1xf32>
    %cst_9 = arith.constant 1.000000e+00 : f32
    %26 = vector.broadcast %cst_9 : f32 to vector<32x1xf32>
    %27 = arith.subf %26, %25 : vector<32x1xf32>
    %cst_10 = arith.constant 0.000000e+00 : f32
    %28 = vector.broadcast %cst_10 : f32 to vector<32x1xf32>
    %29 = arith.maximumf %27, %28 : vector<32x1xf32>
    %30 = arith.mulf %29, %29 : vector<32x1xf32>
    %cst_11 = arith.constant 1.000000e+00 : f32
    %31 = vector.broadcast %cst_11 : f32 to vector<32x1xf32>
    %32 = arith.mulf %31, %30 : vector<32x1xf32>
    %33 = arith.mulf %32, %22 : vector<32x1xf32>
    %c1_i32 = arith.constant 1 : i32
    %34 = arith.muli %arg0, %c1_i32 : i32
    %35 = arith.addi %34, %arg1 : i32
    %c32_i32 = arith.constant 32 : i32
    %36 = arith.muli %35, %c32_i32 : i32
    %c32_i32_12 = arith.constant 32 : i32
    %37 = arith.addi %36, %c32_i32_12 : i32
    %38 = arith.cmpi sle, %37, %0 : i32
    %39 = arith.extui %38 : i1 to i32
    %c0_i32_13 = arith.constant 0 : i32
    %40 = arith.cmpi ne, %39, %c0_i32_13 : i32
    scf.if %40 {
      %c0_18 = arith.constant 0 : index
      %c0_19 = arith.constant 0 : index
      %48 = vector.load %arg6[%c0_18, %c0_19] : memref<1x1xf32, #tpu.memory_space<vmem>>, vector<1x1xf32>
      %49 = vector.shape_cast %33 : vector<32x1xf32> to vector<1x32x1xf32>
      %cst_20 = arith.constant dense<0.000000e+00> : vector<1xf32>
      %50 = vector.multi_reduction <add>, %49, %cst_20 [1, 2] : vector<1x32x1xf32> to vector<1xf32>
      %51 = vector.shape_cast %50 : vector<1xf32> to vector<1x1x1xf32>
      %52 = vector.extract %51[0, 0, 0] : f32 from vector<1x1x1xf32>
      %53 = vector.broadcast %52 : f32 to vector<1x1xf32>
      %54 = arith.addf %48, %53 : vector<1x1xf32>
      %c0_21 = arith.constant 0 : index
      %c0_22 = arith.constant 0 : index
      %55 = vector.load %arg6[%c0_21, %c0_22] : memref<1x1xf32, #tpu.memory_space<vmem>>, vector<1x1xf32>
      tpu.vector_store %arg6[%c0_21, %c0_22], %54 {strides = array<i32>} : memref<1x1xf32, #tpu.memory_space<vmem>>, vector<1x1xf32>,
    } else {
    }
    %c32_i32_14 = arith.constant 32 : i32
    %41 = arith.addi %36, %c32_i32_14 : i32
    %42 = arith.cmpi sgt, %41, %0 : i32
    %43 = arith.extui %42 : i1 to i32
    %c0_i32_15 = arith.constant 0 : i32
    %44 = arith.cmpi ne, %43, %c0_i32_15 : i32
    scf.if %44 {
      %48 = tpu.iota {dimensions = array<i32: 0>} : vector<32x1xi32>
      %49 = vector.broadcast %36 : i32 to vector<32x1xi32>
      %50 = arith.addi %49, %48 : vector<32x1xi32>
      %c0_18 = arith.constant 0 : index
      %c0_19 = arith.constant 0 : index
      %51 = vector.load %arg6[%c0_18, %c0_19] : memref<1x1xf32, #tpu.memory_space<vmem>>, vector<1x1xf32>
      %52 = vector.broadcast %0 : i32 to vector<32x1xi32>
      %53 = arith.cmpi slt, %50, %52 : vector<32x1xi32>
      %cst_20 = arith.constant 0.000000e+00 : f32
      %54 = vector.broadcast %cst_20 : f32 to vector<32x1xf32>
      %55 = arith.select %53, %33, %54 : vector<32x1xi1>, vector<32x1xf32>
      %56 = vector.shape_cast %55 : vector<32x1xf32> to vector<1x32x1xf32>
      %cst_21 = arith.constant dense<0.000000e+00> : vector<1xf32>
      %57 = vector.multi_reduction <add>, %56, %cst_21 [1, 2] : vector<1x32x1xf32> to vector<1xf32>
      %58 = vector.shape_cast %57 : vector<1xf32> to vector<1x1x1xf32>
      %59 = vector.extract %58[0, 0, 0] : f32 from vector<1x1x1xf32>
      %60 = vector.broadcast %59 : f32 to vector<1x1xf32>
      %61 = arith.addf %51, %60 : vector<1x1xf32>
      %c0_22 = arith.constant 0 : index
      %c0_23 = arith.constant 0 : index
      %62 = vector.load %arg6[%c0_22, %c0_23] : memref<1x1xf32, #tpu.memory_space<vmem>>, vector<1x1xf32>
      tpu.vector_store %arg6[%c0_22, %c0_23], %61 {strides = array<i32>} : memref<1x1xf32, #tpu.memory_space<vmem>>, vector<1x1xf32>,
    } else {
    }
    %c0_i32_16 = arith.constant 0 : i32
    %45 = arith.cmpi eq, %arg1, %c0_i32_16 : i32
    %46 = arith.extui %45 : i1 to i32
    %c0_i32_17 = arith.constant 0 : i32
    %47 = arith.cmpi ne, %46, %c0_i32_17 : i32
    scf.if %47 {
      %c0_18 = arith.constant 0 : index
      %c0_19 = arith.constant 0 : index
      %48 = vector.load %arg6[%c0_18, %c0_19] : memref<1x1xf32, #tpu.memory_space<vmem>>, vector<1x1xf32>
      %49 = vector.shape_cast %48 : vector<1x1xf32> to vector<1x1x1xf32>
      %c0_20 = arith.constant 0 : index
      %c0_21 = arith.constant 0 : index
      %c0_22 = arith.constant 0 : index
      %50 = vector.load %arg5[%c0_20, %c0_21, %c0_22] : memref<1x1x1xf32, #tpu.memory_space<vmem>>, vector<1x1x1xf32>
      tpu.vector_store %arg5[%c0_20, %c0_21, %c0_22], %49 {strides = array<i32>} : memref<1x1x1xf32, #tpu.memory_space<vmem>>, vector<1x1x1xf32>,
    } else {
    }
    return
  }
  func.func @transform_0(%arg0: i32, %arg1: i32, %arg2: memref<1xi32, #tpu.memory_space<smem>>) -> (i32, i32) {
    %c1_i32 = arith.constant 1 : i32
    %0 = arith.muli %arg0, %c1_i32 : i32
    %1 = arith.addi %0, %arg1 : i32
    %c0_i32 = arith.constant 0 : i32
    %2 = arith.minsi %1, %c0_i32 : i32
    %c0_i32_0 = arith.constant 0 : i32
    %c0_i32_1 = arith.constant 0 : i32
    return %2, %c0_i32_0 : i32, i32
  }
  func.func @transform_1(%arg0: i32, %arg1: i32, %arg2: memref<1xi32, #tpu.memory_space<smem>>) -> (i32, i32) {
    %c1_i32 = arith.constant 1 : i32
    %0 = arith.muli %arg0, %c1_i32 : i32
    %1 = arith.addi %0, %arg1 : i32
    %c0_i32 = arith.constant 0 : i32
    %2 = arith.minsi %1, %c0_i32 : i32
    %c0_i32_0 = arith.constant 0 : i32
    %c0_i32_1 = arith.constant 0 : i32
    return %2, %c0_i32_0 : i32, i32
  }
  func.func @transform_2(%arg0: i32, %arg1: i32, %arg2: memref<1xi32, #tpu.memory_space<smem>>) -> (i32, i32, i32) {
    %c0_i32 = arith.constant 0 : i32
    %c0_i32_0 = arith.constant 0 : i32
    %c0_i32_1 = arith.constant 0 : i32
    return %arg0, %c0_i32, %c0_i32_0 : i32, i32, i32
  }
}

</mosaic_0001>

<bundles_post_ra>
// kernel: tpu_custom_call.1
= control target key start
LH: loop header
LB: loop body
LE: loop exit
PB: predicated region body
PF: predicated region fallthrough
CT: control target
= control target key end

     0   :  { %vm93_vm0 = vcmask 130048   ;;  %v380_v4 = vmov 0   ;;  %s478_s0 = inlined_call_operand.<no memory space> [shape: s32[1], index: 0, kind: input, shape index: {}]   ;;  %s479_s1 = inlined_call_operand.vmem [shape: f32[32,16], index: 1, kind: input, shape index: {}]   ;;  %s480_s2 = inlined_call_operand.vmem [shape: s32[32,1], index: 2, kind: input, shape index: {}]   ;;  %s481_s3 = inlined_call_operand.hbm [shape: f32[1,1,1], index: 3, kind: output, shape index: {}]  }
   0x1   :  { %v406_v0 = vld [vmem:[%s479_s1 + $0x10] sm:$0xff]  ;;  %v85_v1 = vld [vmem:[%s479_s1] sm:$0xff]  ;;  %327 = vset.pattern.permute.xlu2 %v380_v4  ;;  %329 = vset.pattern.permute.xlu1 %v380_v4 }
   0x2   :  { %v100_v2 = vsel %vm93_vm0, %v406_v0, -inf  ;;  %v94_v3 = vsel %vm93_vm0, %v85_v1, -inf  ;;  %v89_v5 = vld [vmem:[%s480_s2] sm:$0xff] }
   0x3   :  { %101 = vmax.xlane.f32.xlu1 %v100_v2  ;;  %95 = vmax.xlane.f32.xlu0 %v94_v3 }
   0x4   :  { %9 = vsyncpa [#allocation6], 0  ;;  %145 = vperm.xlu2 %327, %v89_v5   ;;  %328 = vset.pattern.permute.xlu0 %v380_v4  ;;  %v86_v6 = vld [vmem:[%s479_s1 + $0x8] sm:$0xff]  ;;  %v88_v7 = vld [vmem:[%s479_s1 + $0x18] sm:$0xff]  ;;  %v142_v19 = vlaneseq  ;;  %vm83_vm5 = vcmask 0   ;;  %v381_v60 = vmov 0.0  }
   0x5   :  { %v97_v8 = vsel %vm93_vm0, %v86_v6, -inf  ;;  %v103_v9 = vsel %vm93_vm0, %v88_v7, -inf  ;;  %v90_v10 = vld [vmem:[%s480_s2 + $0x8] sm:$0xff]  ;;  %v91_v11 = vld [vmem:[%s480_s2 + $0x10] sm:$0xff]  ;;  %v92_v12 = vld [vmem:[%s480_s2 + $0x18] sm:$0xff]  ;;  %p317_p0 = scmp.lt.s32.totalorder %s478_s0, 32 }
   0x6   :  { %v143_v23 = vand.u32 127, %v142_v19  ;;  %84 = vst.msk [vmem:[#allocation2] sm:$0x1] %vm83_vm5, %v381_v60 }
   0xb   :  { %98 = vmax.xlane.f32.xlu0 %v97_v8  ;;  %104 = vmax.xlane.f32.xlu1 %v103_v9 }
   0xc   :  { %148 = vperm.xlu2 %327, %v90_v10  }
  0x1f   :  { %151 = vperm.xlu0 %328, %v91_v11  }
  0x24   :  { %154 = vperm.xlu1 %329, %v92_v12  }
  0x5e   :  { %v146_v28 = vpop.permute.xlu2 %145 }
  0x5f   :  { %vm156_vm1 = vcmp.eq.s32.totalorder %v143_v23, %v146_v28 }
  0x60   :  { %v160_v32 = vsel %vm156_vm1, %v85_v1, 0.0 }
  0x61   :  { %v164_v34 = vsel %vm93_vm0, %v160_v32, 0.0 }
  0x66   :  { %v149_v38 = vpop.permute.xlu2 %148 }
  0x67   :  { %vm157_vm2 = vcmp.eq.s32.totalorder %v143_v23, %v149_v38 }
  0x68   :  { %v161_v40 = vsel %vm157_vm2, %v86_v6, 0.0 }
  0x69   :  { %v167_v44 = vsel %vm93_vm0, %v161_v40, 0.0 }
  0x76   :  { %v434_v13 = vpop.xlane.xlu1 %101  ;;  %v96_v14 = vpop.xlane.xlu0 %95 }
  0x77   :  { %v108_v15 = vsub.f32 %v406_v0, %v434_v13  ;;  %v106_v16 = vsub.f32 %v85_v1, %v96_v14 }
  0x79   :  { %v114_v17 = vmul.f32 1.442695, %v108_v15  ;;  %v110_v18 = vmul.f32 1.442695, %v106_v16 }
  0x7b   :  { %330 = vpow2.f32 %v114_v17 }
  0x7c   :  { %332 = vpow2.f32 %v110_v18 }
  0x7e   :  { %v438_v20 = vpop.xlane.xlu0 %98  ;;  %v440_v21 = vpop.xlane.xlu1 %104 }
  0x7f   :  { %v107_v22 = vsub.f32 %v86_v6, %v438_v20  ;;  %v109_v24 = vsub.f32 %v88_v7, %v440_v21 }
  0x81   :  { %v331_v25 = vpop.eup %330  ;;  %v112_v26 = vmul.f32 1.442695, %v107_v22  ;;  %v116_v31 = vmul.f32 1.442695, %v109_v24 }
  0x82   :  { %v333_v27 = vpop.eup %332  ;;  %v124_v29 = vsel %vm93_vm0, %v331_v25, 0.0 }
  0x83   :  { %334 = vpow2.f32 %v112_v26  ;;  %125 = vadd.xlane.f32.xlu0 %v124_v29  ;;  %v118_v30 = vsel %vm93_vm0, %v333_v27, 0.0 }
  0x84   :  { %119 = vadd.xlane.f32.xlu2 %v118_v30  ;;  %336 = vpow2.f32 %v116_v31 }
  0x89   :  { %v335_v33 = vpop.eup %334 }
  0x8a   :  { %v121_v35 = vsel %vm93_vm0, %v335_v33, 0.0  ;;  %v337_v36 = vpop.eup %336 }
  0x8b   :  { %122 = vadd.xlane.f32.xlu1 %v121_v35  ;;  %v127_v37 = vsel %vm93_vm0, %v337_v36, 0.0 }
  0x8c   :  { %165 = vadd.xlane.f32.xlu2 %v164_v34 }
  0x91   :  { %v152_v42 = vpop.permute.xlu0 %151 }
  0x92   :  { %vm158_vm4 = vcmp.eq.s32.totalorder %v143_v23, %v152_v42 }
  0x93   :  { %v162_v45 = vsel %vm158_vm4, %v406_v0, 0.0 }
  0x94   :  { %128 = vadd.xlane.f32.xlu2 %v127_v37  ;;  %v170_v46 = vsel %vm93_vm0, %v162_v45, 0.0 }
  0x96   :  { %v155_v39 = vpop.permute.xlu1 %154 }
  0x97   :  { %vm159_vm3 = vcmp.eq.s32.totalorder %v143_v23, %v155_v39 }
  0x98   :  { %v163_v41 = vsel %vm159_vm3, %v88_v7, 0.0 }
  0x99   :  { %v173_v43 = vsel %vm93_vm0, %v163_v41, 0.0 }
  0x9a   :  { %174 = vadd.xlane.f32.xlu1 %v173_v43 }
  0x9c   :  { %168 = vadd.xlane.f32.xlu2 %v167_v44 }
  0xa4   :  { %171 = vadd.xlane.f32.xlu2 %v170_v46 }
  0xf6   :  { %v126_v54 = vpop.xlane.xlu0 %125 }
  0xf7   :  { %v120_v47 = vpop.xlane.xlu2 %119 }
  0xf8   :  { %338 = vlog2.f32 %v120_v47 }
  0xfe   :  { %v339_v48 = vpop.eup %338  ;;  %v123_v49 = vpop.xlane.xlu1 %122 }
  0xff   :  { %v131_v50 = vmul.f32 0.6931472, %v339_v48  ;;  %v166_v51 = vpop.xlane.xlu2 %165  ;;  %340 = vlog2.f32 %v123_v49 }
 0x100   :  { %342 = vlog2.f32 %v126_v54 }
 0x101   :  { %v138_v52 = vadd.f32 %v131_v50, %v96_v14 }
 0x103   :  { %v176_v53 = vsub.f32 %v138_v52, %v166_v51 }
 0x105   :  { %v180_v55 = vsub.f32 0.0, %v176_v53  ;;  %v341_v56 = vpop.eup %340 }
 0x106   :  { %v133_v59 = vmul.f32 0.6931472, %v341_v56  ;;  %v343_v61 = vpop.eup %342 }
 0x107   :  { %v184_v57 = vmul.f32 1.442695, %v180_v55  ;;  %v129_v58 = vpop.xlane.xlu2 %128  ;;  %v135_v7 = vmul.f32 0.6931472, %v343_v61 }
 0x108   :  { %344 = vlog2.f32 %v129_v58  ;;  %v139_v63 = vadd.f32 %v133_v59, %v438_v20 }
 0x109   :  { %346 = vpow2.f32 %v184_v57  ;;  %v140_v16 = vadd.f32 %v135_v7, %v434_v13 }
 0x10d   :  { %v175_v5 = vpop.xlane.xlu1 %174 }
 0x10e   :  { %v345_v62 = vpop.eup %344 }
 0x10f   :  { %v347_v0 = vpop.eup %346  ;;  %v137_v1 = vmul.f32 0.6931472, %v345_v62  ;;  %v169_v2 = vpop.xlane.xlu2 %168 }
 0x110   :  { %v192_v3 = vsub.f32 1.0, %v347_v0  ;;  %v177_v4 = vsub.f32 %v139_v63, %v169_v2 }
 0x111   :  { %v141_v6 = vadd.f32 %v137_v1, %v440_v21 }
 0x112   :  { %v196_v8 = vmax.f32 %v192_v3, 0.0  ;;  %v181_v9 = vsub.f32 0.0, %v177_v4 }
 0x113   :  { %v179_v10 = vsub.f32 %v141_v6, %v175_v5 }
 0x114   :  { %v200_v11 = vmul.f32 %v196_v8, %v196_v8  ;;  %v186_v12 = vmul.f32 1.442695, %v181_v9 }
 0x115   :  { %v183_v14 = vsub.f32 0.0, %v179_v10 }
 0x116   :  { %v204_v15 = vmul.f32 %v200_v11, %v176_v53  ;;  %348 = vpow2.f32 %v186_v12 }
 0x117   :  { %v190_v17 = vmul.f32 1.442695, %v183_v14  ;;  %v172_v18 = vpop.xlane.xlu2 %171 }
 0x118   :  { %v178_v20 = vsub.f32 %v140_v16, %v172_v18 }
 0x119   :  { %350 = vpow2.f32 %v190_v17 }
 0x11a   :  { %v182_v22 = vsub.f32 0.0, %v178_v20 }
 0x11c   :  { %v349_v23 = vpop.eup %348  ;;  %v188_v24 = vmul.f32 1.442695, %v182_v22 }
 0x11d   :  { %v193_v25 = vsub.f32 1.0, %v349_v23 }
 0x11e   :  { %352 = vpow2.f32 %v188_v24 }
 0x11f   :  { %v351_v21 = vpop.eup %350  ;;  %v197_v26 = vmax.f32 %v193_v25, 0.0 }
 0x120   :  { %v195_v27 = vsub.f32 1.0, %v351_v21 }
 0x121   :  { %v201_v28 = vmul.f32 %v197_v26, %v197_v26 }
 0x122   :  { %v199_v29 = vmax.f32 %v195_v27, 0.0 }
 0x123   :  { %v205_v30 = vmul.f32 %v201_v28, %v177_v4 }
 0x124   :  { %v353_v31 = vpop.eup %352  ;;  %v203_v32 = vmul.f32 %v199_v29, %v199_v29 }
 0x125   :  { %v194_v33 = vsub.f32 1.0, %v353_v31 }
 0x126   :  { %v207_v34 = vmul.f32 %v203_v32, %v179_v10 }
 0x127   :  { %v198_v13 = vmax.f32 %v194_v33, 0.0  ;;  %214 = sbr.rel (%p317_p0) target bundleno = 490 (0x1ea), region = 17 }
 0x129   :  { %v202_v35 = vmul.f32 %v198_v13, %v198_v13 }
 0x12b   :  { %v206_v36 = vmul.f32 %v202_v35, %v178_v20 }
 0x12c   :  { %vm216_vm6 = vcmask 7168   ;;  %v215_v51 = vld [vmem:[#allocation2] sm:$0x1] }
 0x12d   :  { %v217_v37 = vsel %vm216_vm6, %v204_v15, 0.0  ;;  %v218_v38 = vsel %vm216_vm6, %v205_v30, 0.0  ;;  %v220_v39 = vsel %vm216_vm6, %v206_v36, 0.0  ;;  %v222_v41 = vsel %vm216_vm6, %v207_v34, 0.0 }
 0x12e   :  { %v219_v40 = vadd.f32 %v218_v38, %v217_v37 }
 0x130   :  { %v221_v42 = vadd.f32 %v220_v39, %v219_v40 }
 0x132   :  { %v223_v43 = vadd.f32 %v222_v41, %v221_v42 }
 0x134   :  { %224 = vadd.xlane.f32.xlu0 %v223_v43 }
 0x1a7   :  { %v225_v44 = vpop.xlane.xlu0 %224 }
 0x1a8   :  { %v226_v45 = vrot.slane %v225_v44, 4 }
 0x1aa   :  { %v227_v46 = vadd.f32 %v226_v45, %v225_v44 }
 0x1ac   :  { %v228_v47 = vrot.slane %v227_v46, 2 }
 0x1ae   :  { %v229_v48 = vadd.f32 %v228_v47, %v227_v46 }
 0x1b0   :  { %v230_v49 = vrot.slane %v229_v48, 1 }
 0x1b2   :  { %v231_v50 = vadd.f32 %v230_v49, %v229_v48 }
 0x1b4   :  { %320 = vpush %v231_v50 }
 0x1e5   :  { %s321_s28 = spop %320 }
 0x1e6   :  { %v233_v52 = vstv %s321_s28 }
 0x1e7   :  { %v234_v53 = vadd.f32 %v233_v52, %v215_v51 }
 0x1e9   :  { %236 = vst.msk [vmem:[#allocation2] sm:$0x1] %vm83_vm5, %v234_v53 }
 0x1ea PF:  { %p319_p1 = scmp.ge.s32.totalorder %s478_s0, 32 }
 0x1ec   :  { %240 = sbr.rel (%p319_p1) target bundleno = 692 (0x2b4), region = 21 }
 0x1f1   :  { %v242_v54 = vshrl.u32 %v142_v19, 7  ;;  %v252_v55 = vstv %s478_s0  ;;  %vm261_vm7 = vcmask 7168   ;;  %v251_v12 = vld [vmem:[#allocation2] sm:$0x1] }
 0x1f3   :  { %v243_v56 = vadd.s32 8, %v242_v54  ;;  %v244_v57 = vadd.s32 16, %v242_v54  ;;  %v245_v58 = vadd.s32 24, %v242_v54  ;;  %vm253_vm8 = vcmp.lt.s32.totalorder %v242_v54, %v252_v55 }
 0x1f4   :  { %v257_v59 = vsel %vm253_vm8, %v204_v15, 0.0 }
 0x1f5   :  { %vm254_vm9 = vcmp.lt.s32.totalorder %v243_v56, %v252_v55  ;;  %vm255_vm10 = vcmp.lt.s32.totalorder %v244_v57, %v252_v55  ;;  %vm256_vm11 = vcmp.lt.s32.totalorder %v245_v58, %v252_v55  ;;  %v262_v60 = vsel %vm261_vm7, %v257_v59, 0.0 }
 0x1f6   :  { %v258_v61 = vsel %vm254_vm9, %v205_v30, 0.0  ;;  %v259_v62 = vsel %vm255_vm10, %v206_v36, 0.0  ;;  %v260_v63 = vsel %vm256_vm11, %v207_v34, 0.0 }
 0x1f7   :  { %v263_v19 = vsel %vm261_vm7, %v258_v61, 0.0  ;;  %v265_v0 = vsel %vm261_vm7, %v259_v62, 0.0  ;;  %v267_v2 = vsel %vm261_vm7, %v260_v63, 0.0 }
 0x1f8   :  { %v264_v1 = vadd.f32 %v263_v19, %v262_v60 }
 0x1fa   :  { %v266_v3 = vadd.f32 %v265_v0, %v264_v1 }
 0x1fc   :  { %v268_v4 = vadd.f32 %v267_v2, %v266_v3 }
 0x1fe   :  { %269 = vadd.xlane.f32.xlu0 %v268_v4 }
 0x271   :  { %v270_v5 = vpop.xlane.xlu0 %269 }
 0x272   :  { %v271_v6 = vrot.slane %v270_v5, 4 }
 0x274   :  { %v272_v7 = vadd.f32 %v271_v6, %v270_v5 }
 0x276   :  { %v273_v8 = vrot.slane %v272_v7, 2 }
 0x278   :  { %v274_v9 = vadd.f32 %v273_v8, %v272_v7 }
 0x27a   :  { %v275_v10 = vrot.slane %v274_v9, 1 }
 0x27c   :  { %v276_v11 = vadd.f32 %v275_v10, %v274_v9 }
 0x27e   :  { %322 = vpush %v276_v11 }
 0x2af   :  { %s323_s0 = spop %322 }
 0x2b0   :  { %v278_v14 = vstv %s323_s0 }
 0x2b1   :  { %v279_v15 = vadd.f32 %v278_v14, %v251_v12 }
 0x2b3   :  { %281 = vst.msk [vmem:[#allocation2] sm:$0x1] %vm83_vm5, %v279_v15 }
 0x2b4 PF:  { %s295_s8 = sshll.u32 %s481_s3, 4  ;;  %s382_s9 = smov [#allocation5]   ;;  %s296_s8 = int_to_ptr.hbm [resolvable:$true] %s295_s8 }
 0x2b5   :  { %s293_s10 = sshll.u32 %s382_s9, 4  ;;  %s294_s10 = int_to_ptr.vmem [resolvable:$true] %s293_s10 }
 0x2ba   :  { %v285_v16 = vld [vmem:[#allocation2] sm:$0x1] }
 0x2bb   :  { %287 = vst.msk [vmem:[#allocation5] sm:$0x1] %vm83_vm5, %v285_v16 }
 0x2bc   :  { %298 = dma.vmem_to_hbm [thread:$0]  %s294_s10, 16, %s296_s8, [#allocation6]  }
 0x2bd   :  { %378 = dma.done.wait [#allocation6], 16  }
 0x2be   :  { %379 = vsyncadd [#allocation6], 4294967280 }
 0x2bf   :  { %303 = vsyncpa [#allocation6], 1 }

</bundles_post_ra>
